<compile_context>
chip_gen: v6e
topology: v6e:2x2x1
jax: 0.10.0
libtpu: 0.0.40
codegen_flags: <defaults>
</compile_context>

<pallas_src>
import functools

import numpy as np
import jax
import jax.numpy as jnp
from jax.experimental import pallas as pl
from jax.experimental.pallas import tpu as pltpu

interval = 2
_band_freq_scales = [i for i in range(1, 16 * interval, interval)]  # [1,3,...,31]

_lbf = np.array(
    [_band_freq_scales[0]] + [_band_freq_scales[1]] * 2 + [_band_freq_scales[2]] * 3,
    dtype=np.float32)                                              # 6 elems
_mbf = np.array(
    [_band_freq_scales[3]] * 4 + [_band_freq_scales[4]] * 5 +
    [_band_freq_scales[5]] * 6 + [_band_freq_scales[6]] * 7,
    dtype=np.float32)                                              # 22 elems
_hbf = np.array(
    [_band_freq_scales[7]] * 8 + [_band_freq_scales[8]] * 7 +
    [_band_freq_scales[9]] * 6 + [_band_freq_scales[10]] * 5 +
    [_band_freq_scales[11]] * 4 + [_band_freq_scales[12]] * 3 +
    [_band_freq_scales[13]] * 2 + [_band_freq_scales[14]],
    dtype=np.float32)                                              # 36 elems

FEATURE_DIM = _lbf.size + _mbf.size + _hbf.size                    # 64


def make_base_scale(band_scales):
    """Full 64-element per-feature scale (works for python or traced scalars)."""
    return jnp.concatenate([
        jnp.float32(band_scales[0]) * jnp.asarray(_lbf),
        jnp.float32(band_scales[1]) * jnp.asarray(_mbf),
        jnp.float32(band_scales[2]) * jnp.asarray(_hbf),
    ]).astype(jnp.float32)


def _make_segmented_scale(band_scales, rows_per_line):
    """(rows_per_line, rows_per_line*64) table; row r holds the 64 scales in
    lane segment [64r, 64r+64) and zeros elsewhere (segment mask folded in)."""
    base = make_base_scale(band_scales)
    lane_width = rows_per_line * FEATURE_DIM
    scale = jnp.zeros((rows_per_line, lane_width), jnp.float32)
    for r in range(rows_per_line):
        scale = scale.at[r, r * FEATURE_DIM:(r + 1) * FEATURE_DIM].set(base)
    return scale


def _rate_loss_kernel(z_ref, scale_ref, out_ref, acc_ref, *,
                      total_rows, lines_per_tile, rows_per_line,
                      tiles_per_core, needs_mask):
    """One grid step: scale one (lines_per_tile, L) block, add its per-row L2
    norms into the per-core (lines_per_tile, 1) f32 accumulator; at the last
    step of this core, emit the core's (undivided) partial sum."""
    c = pl.program_id(0)
    i = pl.program_id(1)

    @pl.when(i == 0)
    def _init():
        acc_ref[...] = jnp.zeros_like(acc_ref)

    line_start = (c * tiles_per_core + i) * lines_per_tile   # unclamped global line

    def _accumulate(masked):
        z = z_ref[...].astype(jnp.float32)                   # native-dtype DMA, f32 math
        s_all = scale_ref[...]                               # (R, L) f32, resident
        if masked:
            line_idx = line_start + jax.lax.broadcasted_iota(
                jnp.int32, (lines_per_tile, 1), 0)
        norms = None
        for r in range(rows_per_line):
            zs = z * s_all[r:r + 1, :]                       # other segment zeroed by scale
            sq = jnp.sum(zs * zs, axis=-1, keepdims=True)    # (lines, 1) lane reduce
            if masked:
                # Mask the squared sums (before sqrt) of padding rows.
                valid = (line_idx * rows_per_line + r) < total_rows
                sq = jnp.where(valid, sq, jnp.float32(0.0))
            nr = jnp.sqrt(sq)                                # per-row L2 norm
            norms = nr if norms is None else norms + nr
        acc_ref[...] += norms                                # pure vadd, no per-step reduce

    if needs_mask:
        # Only pay iota/compare/select on tiles that actually contain padding.
        is_tail = (line_start + lines_per_tile) * rows_per_line > total_rows

        @pl.when(jnp.logical_not(is_tail))
        def _fast():
            _accumulate(False)

        @pl.when(is_tail)
        def _tail():
            _accumulate(True)
    else:
        _accumulate(False)

    @pl.when(i == tiles_per_core - 1)
    def _finalize():
        # Single sublane reduce per core; division by M happens in the wrapper.
        out_ref[...] = jnp.sum(acc_ref[...], axis=0, keepdims=True).reshape(1, 1, 1)


def _round_up(x, m):
    return (x + m - 1) // m * m


def rate_loss(z, band_scales, *, target_block_bytes=4 * 1024 * 1024, block_lines=None):
    """z: array of shape (..., 64). Returns scalar mean L2-norm after band scaling."""
    assert z.shape[-1] == FEATURE_DIM
    zf = z.reshape(-1, FEATURE_DIM)                 # keep native dtype (no f32 copy)
    M = zf.shape[0]

    itemsize = jnp.dtype(zf.dtype).itemsize
    granule = {4: 8, 2: 16, 1: 32}.get(itemsize, 8)  # sublane granularity per dtype

    # Pack two 64-wide rows per 128-lane line when M is even (free reshape).
    rows_per_line = 2 if (M % 2 == 0) else 1
    lane_width = rows_per_line * FEATURE_DIM
    zl = zf.reshape(-1, lane_width)
    total_lines = zl.shape[0]

    # Tile size: target ~4 MiB of f32-equivalent data per tile.
    if block_lines is None:
        block_lines = max(granule, target_block_bytes // (lane_width * 4))
    lines_per_tile = min(_round_up(block_lines, granule),
                         _round_up(total_lines, granule))

    num_blocks = pl.cdiv(total_lines, lines_per_tile)
    num_cores = 2 if num_blocks >= 2 else 1          # v7x 2-TC split; harmless on 1-TC
    tiles_per_core = pl.cdiv(num_blocks, num_cores)
    needs_mask = (num_cores * tiles_per_core * lines_per_tile * rows_per_line) != M

    scale = _make_segmented_scale(band_scales, rows_per_line)   # (R, L) f32

    kernel = functools.partial(
        _rate_loss_kernel,
        total_rows=M, lines_per_tile=lines_per_tile, rows_per_line=rows_per_line,
        tiles_per_core=tiles_per_core, needs_mask=needs_mask)

    # VMEM budget: 2 double-buffered input tiles + ~3 f32-sized elementwise
    # temporaries + slack.  Keep the limit within every generation's physical
    # VMEM (raises v5e's 16 MiB default; stays under v7x's 64 MiB physical).
    tile_bytes = lines_per_tile * lane_width * itemsize
    f32_tile_bytes = lines_per_tile * lane_width * 4
    vmem_limit = 2 * tile_bytes + 3 * f32_tile_bytes + (6 << 20)
    vmem_limit = int(min(max(vmem_limit, 16 << 20), 48 << 20))

    max_block = num_blocks - 1
    # Clamp so the (possibly) padding tiles of core 1 never index past the array;
    # their rows are fully masked in-kernel anyway.
    z_index_map = lambda c, i: (jnp.minimum(c * tiles_per_core + i, max_block), 0)

    out = pl.pallas_call(
        kernel,
        out_shape=jax.ShapeDtypeStruct((num_cores, 1, 1), jnp.float32),
        grid=(num_cores, tiles_per_core),
        in_specs=[
            pl.BlockSpec((lines_per_tile, lane_width), z_index_map),  # pipelined z tiles
            pl.BlockSpec((rows_per_line, lane_width), lambda c, i: (0, 0)),  # scale, resident
        ],
        out_specs=pl.BlockSpec((1, 1, 1), lambda c, i: (c, 0, 0)),    # per-core partial
        scratch_shapes=[pltpu.VMEM((lines_per_tile, 1), jnp.float32)],
        compiler_params=pltpu.CompilerParams(
            dimension_semantics=("parallel", "arbitrary"),
            vmem_limit_bytes=vmem_limit),
    )(zl, scale)

    return jnp.sum(out) / jnp.float32(M)


def _rate_loss_ref(z, band_scales):
    """Pure-JAX reference mirroring the PyTorch forward."""
    scale = make_base_scale(band_scales)
    zs = z.astype(jnp.float32) * scale
    norms = jnp.sqrt(jnp.sum(zs * zs, axis=-1))
    return jnp.mean(norms)


if __name__ == "__main__":
    band_scales = (0.5, 1.0, 2.0)  # deterministic synthetic band_scales
    k0, k1, k2 = jax.random.split(jax.random.PRNGKey(0), 3)

    # 1) Even row count -> packed 128-lane layout, single tile, single core.
    z1 = jax.random.normal(k0, (2, 8, FEATURE_DIM), dtype=jnp.float32)
    got = jax.block_until_ready(rate_loss(z1, band_scales))
    want = jax.block_until_ready(_rate_loss_ref(z1, band_scales))
    np.testing.assert_allclose(np.asarray(got), np.asarray(want), rtol=1e-5, atol=1e-5)

    # 2) Odd row count -> 64-wide fallback, multi-tile, 2-core split, masked tail
    #    (including a fully-masked padding tile on core 1).
    z2 = jax.random.normal(k1, (3, 7, FEATURE_DIM), dtype=jnp.float32)
    got2 = jax.block_until_ready(rate_loss(z2, band_scales, block_lines=8))
    want2 = jax.block_until_ready(_rate_loss_ref(z2, band_scales))
    np.testing.assert_allclose(np.asarray(got2), np.asarray(want2), rtol=1e-5, atol=1e-5)

    # 3) bf16 input (native-dtype DMA), packed layout, 2-core split, no mask.
    z3 = jax.random.normal(k2, (4, 16, FEATURE_DIM), dtype=jnp.bfloat16)
    got3 = jax.block_until_ready(rate_loss(z3, band_scales, block_lines=16))
    want3 = jax.block_until_ready(_rate_loss_ref(z3, band_scales))
    np.testing.assert_allclose(np.asarray(got3), np.asarray(want3), rtol=1e-4, atol=1e-4)

    print("KERNEL_OK")
</pallas_src>

<mosaic_0001>
module attributes {stable_mosaic.version = 11 : i64} {
  func.func @_rate_loss_kernel(%arg0: i32, %arg1: i32, %arg2: memref<8x128xf32, #tpu.memory_space<vmem>>, %arg3: memref<2x128xf32, #tpu.memory_space<vmem>>, %arg4: memref<1x1x1xf32, #tpu.memory_space<vmem>>, %arg5: memref<8x1xf32, #tpu.memory_space<vmem>>) attributes {dimension_semantics = [#tpu.dimension_semantics<parallel>, #tpu.dimension_semantics<arbitrary>], iteration_bounds = array<i64: 1, 1>, scalar_prefetch = 0 : i64, scratch_operands = 1 : i64, tpu.core_type = #tpu.core_type<tc>, window_params = [{transform_indices = @transform_0, window_bounds = array<i64: 8, 128>}, {pipeline_mode = #tpu.pipeline_mode<synchronous>, transform_indices = @transform_1, window_bounds = array<i64: 2, 128>}, {transform_indices = @transform_2, window_bounds = array<i64: 1, 1, 1>}]} {
    %c0_i32 = arith.constant 0 : i32
    %0 = arith.cmpi eq, %arg1, %c0_i32 : i32
    %1 = arith.extui %0 : i1 to i32
    %c0_i32_0 = arith.constant 0 : i32
    %2 = arith.cmpi ne, %1, %c0_i32_0 : i32
    scf.if %2 {
      %cst_11 = arith.constant 0.000000e+00 : f32
      %26 = vector.broadcast %cst_11 : f32 to vector<8x1xf32>
      %c0_12 = arith.constant 0 : index
      %c0_13 = arith.constant 0 : index
      %27 = vector.load %arg5[%c0_12, %c0_13] : memref<8x1xf32, #tpu.memory_space<vmem>>, vector<8x1xf32>
      tpu.vector_store %arg5[%c0_12, %c0_13], %26 {strides = array<i32>} : memref<8x1xf32, #tpu.memory_space<vmem>>, vector<8x1xf32>,
    } else {
    }
    %c0 = arith.constant 0 : index
    %c0_1 = arith.constant 0 : index
    %3 = vector.load %arg2[%c0, %c0_1] : memref<8x128xf32, #tpu.memory_space<vmem>>, vector<8x128xf32>
    %c0_2 = arith.constant 0 : index
    %c0_3 = arith.constant 0 : index
    %4 = vector.load %arg3[%c0_2, %c0_3] : memref<2x128xf32, #tpu.memory_space<vmem>>, vector<2x128xf32>
    %5 = vector.extract_strided_slice %4 {offsets = [0, 0], sizes = [1, 128], strides = [1, 1]} : vector<2x128xf32> to vector<1x128xf32>
    %6 = vector.broadcast %5 : vector<1x128xf32> to vector<8x128xf32>
    %7 = arith.mulf %3, %6 : vector<8x128xf32>
    %8 = arith.mulf %7, %7 : vector<8x128xf32>
    %cst = arith.constant dense<0.000000e+00> : vector<8xf32>
    %9 = vector.multi_reduction <add>, %8, %cst [1] : vector<8x128xf32> to vector<8xf32>
    %10 = vector.shape_cast %9 : vector<8xf32> to vector<8x1xf32>
    %11 = math.sqrt %10 : vector<8x1xf32>
    %12 = vector.extract_strided_slice %4 {offsets = [1, 0], sizes = [1, 128], strides = [1, 1]} : vector<2x128xf32> to vector<1x128xf32>
    %13 = vector.broadcast %12 : vector<1x128xf32> to vector<8x128xf32>
    %14 = arith.mulf %3, %13 : vector<8x128xf32>
    %15 = arith.mulf %14, %14 : vector<8x128xf32>
    %cst_4 = arith.constant dense<0.000000e+00> : vector<8xf32>
    %16 = vector.multi_reduction <add>, %15, %cst_4 [1] : vector<8x128xf32> to vector<8xf32>
    %17 = vector.shape_cast %16 : vector<8xf32> to vector<8x1xf32>
    %18 = math.sqrt %17 : vector<8x1xf32>
    %19 = arith.addf %11, %18 : vector<8x1xf32>
    %c0_5 = arith.constant 0 : index
    %c0_6 = arith.constant 0 : index
    %20 = vector.load %arg5[%c0_5, %c0_6] : memref<8x1xf32, #tpu.memory_space<vmem>>, vector<8x1xf32>
    %21 = arith.addf %20, %19 : vector<8x1xf32>
    %c0_7 = arith.constant 0 : index
    %c0_8 = arith.constant 0 : index
    %22 = vector.load %arg5[%c0_7, %c0_8] : memref<8x1xf32, #tpu.memory_space<vmem>>, vector<8x1xf32>
    tpu.vector_store %arg5[%c0_7, %c0_8], %21 {strides = array<i32>} : memref<8x1xf32, #tpu.memory_space<vmem>>, vector<8x1xf32>,
    %c0_i32_9 = arith.constant 0 : i32
    %23 = arith.cmpi eq, %arg1, %c0_i32_9 : i32
    %24 = arith.extui %23 : i1 to i32
    %c0_i32_10 = arith.constant 0 : i32
    %25 = arith.cmpi ne, %24, %c0_i32_10 : i32
    scf.if %25 {
      %c0_11 = arith.constant 0 : index
      %c0_12 = arith.constant 0 : index
      %26 = vector.load %arg5[%c0_11, %c0_12] : memref<8x1xf32, #tpu.memory_space<vmem>>, vector<8x1xf32>
      %cst_13 = arith.constant dense<0.000000e+00> : vector<1xf32>
      %27 = vector.multi_reduction <add>, %26, %cst_13 [0] : vector<8x1xf32> to vector<1xf32>
      %28 = vector.shape_cast %27 : vector<1xf32> to vector<1x1xf32>
      %29 = vector.shape_cast %28 : vector<1x1xf32> to vector<1x1x1xf32>
      %c0_14 = arith.constant 0 : index
      %c0_15 = arith.constant 0 : index
      %c0_16 = arith.constant 0 : index
      %30 = vector.load %arg4[%c0_14, %c0_15, %c0_16] : memref<1x1x1xf32, #tpu.memory_space<vmem>>, vector<1x1x1xf32>
      tpu.vector_store %arg4[%c0_14, %c0_15, %c0_16], %29 {strides = array<i32>} : memref<1x1x1xf32, #tpu.memory_space<vmem>>, vector<1x1x1xf32>,
    } else {
    }
    return
  }
  func.func @transform_0(%arg0: i32, %arg1: i32) -> (i32, i32) {
    %c1_i32 = arith.constant 1 : i32
    %0 = arith.muli %arg0, %c1_i32 : i32
    %1 = arith.addi %0, %arg1 : i32
    %c0_i32 = arith.constant 0 : i32
    %2 = arith.minsi %1, %c0_i32 : i32
    %c0_i32_0 = arith.constant 0 : i32
    %c0_i32_1 = arith.constant 0 : i32
    return %2, %c0_i32_0 : i32, i32
  }
  func.func @transform_1(%arg0: i32, %arg1: i32) -> (i32, i32) {
    %c0_i32 = arith.constant 0 : i32
    %c0_i32_0 = arith.constant 0 : i32
    %c0_i32_1 = arith.constant 0 : i32
    return %c0_i32, %c0_i32_0 : i32, i32
  }
  func.func @transform_2(%arg0: i32, %arg1: i32) -> (i32, i32, i32) {
    %c0_i32 = arith.constant 0 : i32
    %c0_i32_0 = arith.constant 0 : i32
    %c0_i32_1 = arith.constant 0 : i32
    return %arg0, %c0_i32, %c0_i32_0 : i32, i32, i32
  }
}

</mosaic_0001>

<bundles_post_ra>
// kernel: tpu_custom_call.1
= control target key start
LH: loop header
LB: loop body
LE: loop exit
PB: predicated region body
PF: predicated region fallthrough
CT: control target
= control target key end

     0   :  { %7 = vsyncpa [#allocation4], 0  ;;  %s223_s0 = inlined_call_operand.hbm [shape: f32[8,128], index: 0, kind: input, shape index: {}]   ;;  %s224_s1 = inlined_call_operand.hbm [shape: f32[2,128], index: 1, kind: input, shape index: {}]   ;;  %s225_s2 = inlined_call_operand.hbm [shape: f32[1,1,1], index: 2, kind: output, shape index: {}]  }
   0x1   :  { %8 = vsyncpa [#allocation7], 0 }
   0x2   :  { %9 = vsyncpa [#allocation5], 0  ;;  %s192_s9 = smov [#allocation3]   ;;  %s193_s11 = smov [#allocation6]  }
   0x3   :  { %s21_s10 = sshll.u32 %s192_s9, 4  ;;  %s31_s12 = sshll.u32 %s193_s11, 4  ;;  %s22_s10 = int_to_ptr.vmem [resolvable:$true] %s21_s10  ;;  %s32_s12 = int_to_ptr.vmem [resolvable:$true] %s31_s12 }
   0x4   :  { %s134_s13 = scalar_lea.vmem %s22_s10, 128  ;;  %p139_p1 = scmp.lt.s32.totalorder %s22_s10, %s22_s10 }
   0x5   :  { %p135_p0 = scmp.ne.s32.totalorder %s22_s10, %s134_s13  ;;  %p140_p2 = scmp.lt.s32.totalorder %s134_s13, %s134_s13 }
   0x7   :  { %p141_p3 = por %p140_p2, %p139_p1 }
   0x9   :  { %p142_p4 = pnand %p141_p3, %p135_p0 }
   0xb   :  { %145 = shalt.err (!%p142_p4)
}
   0xc   :  { %24 = dma.hbm_to_vmem [thread:$0]  %s223_s0, 128, %s22_s10, [#allocation4]  }
   0xd   :  { %s154_s16 = scalar_lea.vmem %s32_s12, 32  ;;  %p159_p6 = scmp.lt.s32.totalorder %s32_s12, %s32_s12 }
   0xe   :  { %p155_p5 = scmp.ne.s32.totalorder %s32_s12, %s154_s16  ;;  %p160_p7 = scmp.lt.s32.totalorder %s154_s16, %s154_s16 }
  0x10   :  { %p161_p8 = por %p160_p7, %p159_p6 }
  0x12   :  { %p162_p9 = pnand %p161_p8, %p155_p5 }
  0x14   :  { %165 = shalt.err (!%p162_p9)
}
  0x15   :  { %34 = dma.hbm_to_vmem [thread:$0]  %s224_s1, 32, %s32_s12, [#allocation7]  }
  0x16   :  { %186 = dma.done.wait [#allocation4], 128  }
  0x17   :  { %187 = vsyncadd [#allocation4], 4294967168 }
  0x18   :  { %188 = dma.done.wait [#allocation7], 32  }
  0x19   :  { %189 = vsyncadd [#allocation7], 4294967264  ;;  %v52_v0 = vlaneseq  ;;  %v50_v4 = vld [vmem:[#allocation3] sm:$0xff]  ;;  %v51_v5 = vld [vmem:[#allocation6] sm:$0x3]  ;;  %vm48_vm0 = vcmask 7168  }
  0x1a   :  { %v194_v12 = vmov 0.0   ;;  %s195_s0 = smov [#allocation8]   ;;  %vm98_vm5 = vcmask 0  }
  0x1b   :  { %v53_v1 = vshrl.u32 %v52_v0, 7  ;;  %49 = vst.msk [vmem:[#allocation2] sm:$0xff] %vm48_vm0, %v194_v12  ;;  %s106_s1 = sshll.u32 %s195_s0, 4  ;;  %s107_s1 = int_to_ptr.vmem [resolvable:$true] %s106_s1 }
  0x1c   :  { %s166_s19 = scalar_lea.vmem %s107_s1, 16  ;;  %s170_s20 = scalar_lea.vmem %s107_s1, 32 }
  0x1d   :  { %v54_v2 = vsub.s32 0, %v53_v1  ;;  %v69_v3 = vsub.s32 1, %v53_v1  ;;  %p167_p10 = scmp.ne.s32.totalorder %s107_s1, %s166_s19  ;;  %p171_p11 = scmp.lt.s32.totalorder %s107_s1, %s107_s1 }
  0x1e   :  { %p172_p12 = scmp.lt.s32.totalorder %s170_s20, %s166_s19 }
  0x1f   :  { %v55_v6 = vrot.slane %v51_v5, %v54_v2  ;;  %v70_v7 = vrot.slane %v51_v5, %v69_v3 }
  0x20   :  { %p173_p13 = por %p172_p12, %p171_p11 }
  0x21   :  { %v56_v8 = vmul.f32 %v55_v6, %v50_v4  ;;  %v71_v9 = vmul.f32 %v70_v7, %v50_v4 }
  0x22   :  { %v83_v25 = vld [vmem:[#allocation2] sm:$0xff]  ;;  %p174_p0 = pnand %p173_p13, %p167_p10 }
  0x23   :  { %v57_v10 = vmul.f32 %v56_v8, %v56_v8  ;;  %v72_v11 = vmul.f32 %v71_v9, %v71_v9 }
  0x25   :  { %58 = vadd.xlane.f32.xlu0 %v57_v10 }
  0x29   :  { %73 = vadd.xlane.f32.xlu0 %v72_v11 }
  0xae   :  { %v59_v13 = vpop.xlane.xlu0 %58 }
  0xaf   :  { %122 = vrsqrt.f32 %v59_v13  ;;  %vm62_vm1 = vcmp.eq.f32.partialorder %v59_v13, inf  ;;  %v65_v20 = vand.u32 2147483648, %v59_v13  ;;  %vm64_vm3 = vcmp.eq.f32.partialorder %v59_v13, 0.0 }
  0xb2   :  { %v74_v14 = vpop.xlane.xlu0 %73 }
  0xb3   :  { %124 = vrsqrt.f32 %v74_v14  ;;  %vm77_vm2 = vcmp.eq.f32.partialorder %v74_v14, inf  ;;  %v80_v21 = vand.u32 2147483648, %v74_v14  ;;  %vm79_vm4 = vcmp.eq.f32.partialorder %v74_v14, 0.0 }
  0xbc   :  { %v123_v15 = vpop.eup %122 }
  0xbd   :  { %v61_v16 = vmul.f32 %v123_v15, %v59_v13 }
  0xbf   :  { %v63_v18 = vsel %vm62_vm1, %v59_v13, %v61_v16 }
  0xc0   :  { %v125_v17 = vpop.eup %124  ;;  %v66_v23 = vsel %vm64_vm3, %v65_v20, %v63_v18 }
  0xc1   :  { %v76_v19 = vmul.f32 %v125_v17, %v74_v14 }
  0xc3   :  { %v78_v22 = vsel %vm77_vm2, %v74_v14, %v76_v19 }
  0xc4   :  { %v81_v24 = vsel %vm79_vm4, %v80_v21, %v78_v22 }
  0xc5   :  { %v82_v26 = vadd.f32 %v81_v24, %v66_v23 }
  0xc7   :  { %v84_v27 = vadd.f32 %v83_v25, %v82_v26 }
  0xc9   :  { %86 = vst.msk [vmem:[#allocation2] sm:$0xff] %vm48_vm0, %v84_v27 }
  0xd0   :  { %v90_v28 = vld [vmem:[#allocation2] sm:$0xff] }
  0xd1   :  { %v91_v29 = vsel %vm48_vm0, %v90_v28, 0.0 }
  0xd2   :  { %v92_v30 = vrot.slane %v91_v29, 4 }
  0xd4   :  { %v93_v31 = vadd.f32 %v92_v30, %v91_v29 }
  0xd6   :  { %v94_v32 = vrot.slane %v93_v31, 2 }
  0xd8   :  { %v95_v33 = vadd.f32 %v94_v32, %v93_v31 }
  0xda   :  { %v96_v34 = vrot.slane %v95_v33, 1 }
  0xdc   :  { %v97_v35 = vadd.f32 %v96_v34, %v95_v33 }
  0xde   :  { %99 = vst.msk [vmem:[#allocation8] sm:$0x1] %vm98_vm5, %v97_v35 }
  0xdf   :  { %177 = shalt.err (!%p174_p0)
}
  0xe0   :  { %109 = dma.vmem_to_hbm [thread:$0]  %s107_s1, 16, %s225_s2, [#allocation5]  }
  0xe1   :  { %190 = dma.done.wait [#allocation5], 16  }
  0xe2   :  { %191 = vsyncadd [#allocation5], 4294967280 }
  0xe3   :  { %113 = vsyncpa [#allocation4], 1 }
  0xe4   :  { %114 = vsyncpa [#allocation7], 1 }
  0xe5   :  { %115 = vsyncpa [#allocation5], 1 }

</bundles_post_ra>
